<compile_context>
chip_gen: v7x
topology: tpu7x:2x2x1
jax: 0.10.0
libtpu: 0.0.40
codegen_flags: <defaults>
</compile_context>

<pallas_src>
import jax
import jax.numpy as jnp
from jax.experimental import pallas as pl
from jax.experimental.pallas import tpu as pltpu

# Small shapes consistent with the module: batch=2, channels=4, spatial=16.
B, C, H, W = 2, 4, 16, 16
FEAT = C * H * W          # 1024  (multiple of 128 -> lane-dense output slab)


def _flatten_dma_kernel(x_hbm, o_hbm, sem):
    """Single HBM->HBM DMA of the already-flattened (B, FEAT) slab.

    x_hbm : (B, FEAT) input, left in HBM (memory_space=pl.ANY)
    o_hbm : (B, FEAT) output, left in HBM (memory_space=pl.ANY)
    sem   : scalar DMA semaphore scratch
    """
    cp = pltpu.make_async_copy(x_hbm, o_hbm, sem)
    cp.start()
    cp.wait()


@jax.jit
def flatten_forward(x):
    """Pallas equivalent of Flatten.forward: x.view(x.size(0), -1)."""
    b = x.shape[0]
    feat = 1
    for d in x.shape[1:]:
        feat *= d
    # Contiguous row-major merge of trailing dims == torch .view
    # (metadata-only under XLA); the kernel then does the one HBM->HBM copy.
    x2d = x.reshape(b, feat)

    return pl.pallas_call(
        _flatten_dma_kernel,
        out_shape=jax.ShapeDtypeStruct((b, feat), x.dtype),
        in_specs=[pl.BlockSpec(memory_space=pl.ANY)],
        out_specs=pl.BlockSpec(memory_space=pl.ANY),
        scratch_shapes=[pltpu.SemaphoreType.DMA(())],
        compiler_params=pltpu.CompilerParams(has_side_effects=True),
    )(x2d)


if __name__ == "__main__":
    key = jax.random.PRNGKey(0)
    x = jax.random.normal(key, (B, C, H, W), jnp.float32)

    out = jax.block_until_ready(flatten_forward(x))

    # Pure-JAX reference of Flatten.
    ref = x.reshape(B, -1)
    assert out.shape == (B, FEAT)
    assert out.dtype == x.dtype
    assert jnp.array_equal(out, ref)

    print("KERNEL_OK")
</pallas_src>

<mosaic_0001>
module attributes {stable_mosaic.version = 11 : i64} {
  func.func @_flatten_dma_kernel(%arg0: memref<2x1024xf32, #tpu.memory_space<any>>, %arg1: memref<2x1024xf32, #tpu.memory_space<any>>, %arg2: memref<!tpu.dma_semaphore, #tpu.memory_space<semaphore_mem>>) attributes {dimension_semantics = [], scalar_prefetch = 0 : i64, scratch_operands = 1 : i64, tpu.core_type = #tpu.core_type<tc>} {
    tpu.enqueue_dma source(%arg0 : memref<2x1024xf32, #tpu.memory_space<any>>) target(%arg1 : memref<2x1024xf32, #tpu.memory_space<any>>) target_semaphore(%arg2 : memref<!tpu.dma_semaphore, #tpu.memory_space<semaphore_mem>>)
    tpu.wait_dma2 semaphore(%arg2 : memref<!tpu.dma_semaphore, #tpu.memory_space<semaphore_mem>>) src(%arg0 : memref<2x1024xf32, #tpu.memory_space<any>>) dst(%arg1 : memref<2x1024xf32, #tpu.memory_space<any>>)
    return
  }
}

</mosaic_0001>

<bundles_post_ra>
// kernel: flatten_forward.1
= control target key start
LH: loop header
LB: loop body
LE: loop exit
PB: predicated region body
PF: predicated region fallthrough
CT: control target
= control target key end

     0   :  { %s77_s0 = inlined_call_operand.vmem [shape: f32[2,1024], index: 0, kind: input, shape index: {}]   ;;  %s78_s1 = inlined_call_operand.hbm [shape: f32[2,1024], index: 1, kind: output, shape index: {}]  }
   0x1   :  { %s13_s8 = sshll.u32 %s77_s0, 4  ;;  %s14_s8 = int_to_ptr.vmem [resolvable:$true] %s13_s8 }
   0x2   :  { %s28_s9 = scalar_lea.vmem %s14_s8, 256  ;;  %p33_p1 = scmp.lt.s32.totalorder %s14_s8, %s14_s8 }
   0x3   :  { %p29_p0 = scmp.ne.s32.totalorder %s14_s8, %s28_s9  ;;  %p34_p2 = scmp.lt.s32.totalorder %s28_s9, %s28_s9 }
   0x5   :  { %p35_p3 = por %p34_p2, %p33_p1 }
   0x7   :  { %p36_p4 = pnand %p35_p3, %p29_p0 }
   0x9   :  { %39 = shalt.err (!%p36_p4)  }
   0xa   :  { %s40_s12 = scalar_lea.hbm %s78_s1, 256 }
   0xb   :  { %p41_p5 = scmp.ne.s32.totalorder %s78_s1, %s40_s12  ;;  %p44_p6 = scmp.lt.u32.totalorder %s40_s12, %s78_s1 }
   0xd   :  { %p46_p7 = pnand %p44_p6, %p41_p5 }
   0xf   :  { %49 = shalt.err (!%p46_p7)  }
  0x10   :  { %16 = dma.vmem_to_hbm [thread:$0]  %s14_s8, 256, %s78_s1, [#allocation2] }
  0x11   :  { %50 = dma.done.wait [#allocation2], 256 }
  0x12   :  { %51 = vsyncadd [#allocation2], 4294967040 }
  0x13   :  { %21 = vsyncmov [#allocation2] }
  0x16   :  { %s22_s18 = vpop.sfrf %21 }
  0x17   :  { %p27_p8 = scmp.ne.s32.totalorder %s22_s18, 0 }
  0x19   :  { %26 = shalt.err (%p27_p8)  }

</bundles_post_ra>
